<compile_context>
chip_gen: v6e
topology: v6e:2x2x1
jax: 0.10.0
libtpu: 0.0.40
codegen_flags: <defaults>
</compile_context>

<pallas_src>
import jax
import jax.numpy as jnp
from jax.experimental import pallas as pl
from jax.experimental.pallas import tpu as pltpu

LANE = 128
NUM_SPLITS = 2   # shard the streaming reduction across (up to) 2 TensorCores


def _tpu_config():
    """Per-generation (block_rows, vmem_limit_bytes, use_core_parallel)."""
    try:
        kind = jax.devices()[0].device_kind.lower()
    except Exception:
        kind = ""
    if "v7" in kind or "tpu7" in kind:
        # v7x: only 64 MiB physical VMEM per TC -> 8192x128 f32 blocks
        # (16 MiB across 2 inputs x 2 buffers); CORE_PARALLEL to engage both TCs.
        return 8192, 40 << 20, True
    if "v6" in kind:
        # v6e: HBM-bound; go big (8 MiB/block -> 32 MiB of input double-buffers)
        # with an explicit scoped-VMEM limit (default is 32 MiB).
        return 16384, 64 << 20, False
    if "v5e" in kind or "v5 lite" in kind or "v5litepod" in kind:
        # v5e: purely HBM-bound; 4096 rows is plenty, stay under scoped VMEM.
        return 4096, 32 << 20, False
    # Unknown / older generations: conservative default.
    return 4096, 32 << 20, False


def ordinal_loss(predicted, actual):
    """Pallas equivalent of Ordinal_loss.forward. Returns a scalar float32."""
    assert predicted.shape == actual.shape
    n = predicted.size

    max_block_rows, vmem_limit, use_core_parallel = _tpu_config()

    p_flat = predicted.reshape(-1)
    a_flat = actual.reshape(-1)

    # Pad the ragged tail (rare) with p=1, a=1: under the -100 log clamp the
    # padded elements contribute exactly 0, so no per-element mask is needed
    # for them anywhere in the kernel.
    pad = (-n) % (8 * LANE)
    if pad:
        p_flat = jnp.concatenate([p_flat, jnp.ones((pad,), p_flat.dtype)])
        a_flat = jnp.concatenate([a_flat, jnp.ones((pad,), a_flat.dtype)])

    rows = p_flat.size // LANE          # multiple of 8 by construction
    p2 = p_flat.reshape(rows, LANE)     # free re-layout of a contiguous array
    a2 = a_flat.reshape(rows, LANE)

    block_rows = min(max_block_rows, rows)            # multiple of 8
    acc_rows = 64 if block_rows % 64 == 0 else 8      # wide accumulator if possible
    total_blocks = pl.cdiv(rows, block_rows)
    n_i = pl.cdiv(total_blocks, NUM_SPLITS)

    has_dup = (NUM_SPLITS * n_i) != total_blocks      # clamped duplicate blocks exist
    needs_tail = (rows % block_rows) != 0             # last block window runs past rows

    def in_index_map(c, i):
        # Clamp so an odd block count never indexes past the array; the
        # duplicated block is skipped in the kernel via a scalar guard on the
        # *unclamped* block index, so it contributes exactly 0.
        return (jnp.minimum(c * n_i + i, total_blocks - 1), 0)

    def kernel(p_ref, a_ref, o_ref):
        c = pl.program_id(0)
        i = pl.program_id(1)

        @pl.when(i == 0)
        def _():
            o_ref[...] = jnp.zeros_like(o_ref)

        block_idx = c * n_i + i   # un-clamped logical block index

        def accumulate(x):
            # VALU-only partial reduction into the resident (acc_rows, LANE)
            # accumulator (independent accumulation lanes -> better ILP).
            o_ref[...] += jnp.sum(
                x.reshape(block_rows // acc_rows, acc_rows, LANE), axis=0)

        def body():
            p = p_ref[...].astype(jnp.float32)
            a = a_ref[...].astype(jnp.float32)
            # PyTorch-style clamp: exact for any p in [e^-100, 1 - e^-100],
            # avoids -inf/NaN at the endpoints, and makes the p=1,a=1 pad
            # contribute exactly 0.  Refactored form saves one multiply.
            log_p = jnp.maximum(jnp.log(p), -100.0)
            log_1mp = jnp.maximum(jnp.log(1.0 - p), -100.0)
            bce = log_1mp + a * (log_p - log_1mp)
            # TODO(synk): for guaranteed-hard {0,1} labels a single-log variant
            # (select p vs 1-p before the log) would halve EUP pushes, but it
            # changes results for soft labels so it is not applied here.

            if needs_tail:
                is_last = block_idx == total_blocks - 1

                @pl.when(is_last)
                def _():
                    # Only the final block's window runs past `rows`; its
                    # out-of-bounds rows hold unspecified data, so mask them
                    # with a row-level compare (no per-lane index, no int32
                    # element-index overflow).
                    row_ids = jax.lax.broadcasted_iota(
                        jnp.int32, (block_rows, LANE), 0)
                    grow = row_ids + block_idx * block_rows
                    accumulate(jnp.where(grow < rows, bce, 0.0))

                @pl.when(jnp.logical_not(is_last))
                def _():
                    accumulate(bce)
            else:
                accumulate(bce)

        if has_dup:
            # Skip clamped duplicate blocks entirely (scalar guard only).
            pl.when(block_idx < total_blocks)(body)
        else:
            body()

    lead_sem = pltpu.CORE_PARALLEL if use_core_parallel else pltpu.PARALLEL
    bytes_per_elem = predicted.dtype.itemsize + actual.dtype.itemsize

    out = pl.pallas_call(
        kernel,
        out_shape=jax.ShapeDtypeStruct((NUM_SPLITS * acc_rows, LANE), jnp.float32),
        grid_spec=pltpu.PrefetchScalarGridSpec(
            num_scalar_prefetch=0,
            grid=(NUM_SPLITS, n_i),
            in_specs=[
                pl.BlockSpec((block_rows, LANE), in_index_map),
                pl.BlockSpec((block_rows, LANE), in_index_map),
            ],
            out_specs=pl.BlockSpec((acc_rows, LANE), lambda c, i: (c, 0)),
        ),
        compiler_params=pltpu.CompilerParams(
            dimension_semantics=(lead_sem, pltpu.ARBITRARY),
            vmem_limit_bytes=vmem_limit,
        ),
        cost_estimate=pl.CostEstimate(
            flops=7 * n,
            transcendentals=2 * n,
            bytes_accessed=n * bytes_per_elem + NUM_SPLITS * acc_rows * LANE * 4,
        ),
    )(p2, a2)

    # Final tiny cross-lane reduce (NUM_SPLITS x (acc_rows,128) partials) + negation.
    return -jnp.sum(out)


if __name__ == "__main__":
    key = jax.random.PRNGKey(0)
    k1, k2 = jax.random.split(key)

    # Small shapes consistent with a typical NCHW prediction map.
    shape = (2, 4, 16, 16)
    # predicted must lie in (0, 1); actual are {0, 1} labels.
    predicted = jax.nn.sigmoid(jax.random.normal(k1, shape, dtype=jnp.float32))
    predicted = jnp.clip(predicted, 1e-4, 1.0 - 1e-4)
    actual = jax.random.bernoulli(k2, 0.5, shape).astype(jnp.float32)

    loss = ordinal_loss(predicted, actual)
    loss = jax.block_until_ready(loss)

    # Pure-JAX reference check.
    ref = -jnp.sum(actual * jnp.log(predicted)
                   + (1.0 - actual) * jnp.log(1.0 - predicted))
    assert jnp.allclose(loss, ref, rtol=1e-5, atol=1e-4), (loss, ref)

    print("KERNEL_OK")
</pallas_src>

<mosaic_0001>
module attributes {stable_mosaic.version = 11 : i64} {
  func.func @kernel(%arg0: i32, %arg1: i32, %arg2: memref<16x128xf32, #tpu.memory_space<vmem>>, %arg3: memref<16x128xf32, #tpu.memory_space<vmem>>, %arg4: memref<8x128xf32, #tpu.memory_space<vmem>>) attributes {dimension_semantics = [#tpu.dimension_semantics<parallel>, #tpu.dimension_semantics<arbitrary>], iteration_bounds = array<i64: 2, 1>, scalar_prefetch = 0 : i64, scratch_operands = 0 : i64, tpu.core_type = #tpu.core_type<tc>, window_params = [{transform_indices = @transform_0, window_bounds = array<i64: 16, 128>}, {transform_indices = @transform_1, window_bounds = array<i64: 16, 128>}, {transform_indices = @transform_2, window_bounds = array<i64: 8, 128>}]} {
    %c0_i32 = arith.constant 0 : i32
    %0 = arith.cmpi eq, %arg1, %c0_i32 : i32
    %1 = arith.extui %0 : i1 to i32
    %c0_i32_0 = arith.constant 0 : i32
    %2 = arith.cmpi ne, %1, %c0_i32_0 : i32
    scf.if %2 {
      %cst = arith.constant 0.000000e+00 : f32
      %8 = vector.broadcast %cst : f32 to vector<8x128xf32>
      %c0 = arith.constant 0 : index
      %c0_3 = arith.constant 0 : index
      %9 = vector.load %arg4[%c0, %c0_3] : memref<8x128xf32, #tpu.memory_space<vmem>>, vector<8x128xf32>
      tpu.vector_store %arg4[%c0, %c0_3], %8 {strides = array<i32>} : memref<8x128xf32, #tpu.memory_space<vmem>>, vector<8x128xf32>,
    } else {
    }
    %c1_i32 = arith.constant 1 : i32
    %3 = arith.muli %arg0, %c1_i32 : i32
    %4 = arith.addi %3, %arg1 : i32
    %c1_i32_1 = arith.constant 1 : i32
    %5 = arith.cmpi slt, %4, %c1_i32_1 : i32
    %6 = arith.extui %5 : i1 to i32
    %c0_i32_2 = arith.constant 0 : i32
    %7 = arith.cmpi ne, %6, %c0_i32_2 : i32
    scf.if %7 {
      %c0 = arith.constant 0 : index
      %c0_3 = arith.constant 0 : index
      %8 = vector.load %arg2[%c0, %c0_3] : memref<16x128xf32, #tpu.memory_space<vmem>>, vector<16x128xf32>
      %c0_4 = arith.constant 0 : index
      %c0_5 = arith.constant 0 : index
      %9 = vector.load %arg3[%c0_4, %c0_5] : memref<16x128xf32, #tpu.memory_space<vmem>>, vector<16x128xf32>
      %10 = math.log %8 : vector<16x128xf32>
      %cst = arith.constant -1.000000e+02 : f32
      %11 = vector.broadcast %cst : f32 to vector<16x128xf32>
      %12 = arith.maximumf %10, %11 : vector<16x128xf32>
      %cst_6 = arith.constant 1.000000e+00 : f32
      %13 = vector.broadcast %cst_6 : f32 to vector<16x128xf32>
      %14 = arith.subf %13, %8 : vector<16x128xf32>
      %15 = math.log %14 : vector<16x128xf32>
      %cst_7 = arith.constant -1.000000e+02 : f32
      %16 = vector.broadcast %cst_7 : f32 to vector<16x128xf32>
      %17 = arith.maximumf %15, %16 : vector<16x128xf32>
      %18 = arith.subf %12, %17 : vector<16x128xf32>
      %19 = arith.mulf %9, %18 : vector<16x128xf32>
      %20 = arith.addf %17, %19 : vector<16x128xf32>
      %c0_8 = arith.constant 0 : index
      %c0_9 = arith.constant 0 : index
      %21 = vector.load %arg4[%c0_8, %c0_9] : memref<8x128xf32, #tpu.memory_space<vmem>>, vector<8x128xf32>
      %22 = vector.shape_cast %20 : vector<16x128xf32> to vector<2x8x128xf32>
      %cst_10 = arith.constant dense<0.000000e+00> : vector<8x128xf32>
      %23 = vector.multi_reduction <add>, %22, %cst_10 [0] : vector<2x8x128xf32> to vector<8x128xf32>
      %24 = arith.addf %21, %23 : vector<8x128xf32>
      %c0_11 = arith.constant 0 : index
      %c0_12 = arith.constant 0 : index
      %25 = vector.load %arg4[%c0_11, %c0_12] : memref<8x128xf32, #tpu.memory_space<vmem>>, vector<8x128xf32>
      tpu.vector_store %arg4[%c0_11, %c0_12], %24 {strides = array<i32>} : memref<8x128xf32, #tpu.memory_space<vmem>>, vector<8x128xf32>,
    } else {
    }
    return
  }
  func.func @transform_0(%arg0: i32, %arg1: i32) -> (i32, i32) {
    %c1_i32 = arith.constant 1 : i32
    %0 = arith.muli %arg0, %c1_i32 : i32
    %1 = arith.addi %0, %arg1 : i32
    %c0_i32 = arith.constant 0 : i32
    %2 = arith.minsi %1, %c0_i32 : i32
    %c0_i32_0 = arith.constant 0 : i32
    %c0_i32_1 = arith.constant 0 : i32
    return %2, %c0_i32_0 : i32, i32
  }
  func.func @transform_1(%arg0: i32, %arg1: i32) -> (i32, i32) {
    %c1_i32 = arith.constant 1 : i32
    %0 = arith.muli %arg0, %c1_i32 : i32
    %1 = arith.addi %0, %arg1 : i32
    %c0_i32 = arith.constant 0 : i32
    %2 = arith.minsi %1, %c0_i32 : i32
    %c0_i32_0 = arith.constant 0 : i32
    %c0_i32_1 = arith.constant 0 : i32
    return %2, %c0_i32_0 : i32, i32
  }
  func.func @transform_2(%arg0: i32, %arg1: i32) -> (i32, i32) {
    %c0_i32 = arith.constant 0 : i32
    %c0_i32_0 = arith.constant 0 : i32
    return %arg0, %c0_i32 : i32, i32
  }
}

</mosaic_0001>

<bundles_post_ra>
// kernel: tpu_custom_call.1
= control target key start
LH: loop header
LB: loop body
LE: loop exit
PB: predicated region body
PF: predicated region fallthrough
CT: control target
= control target key end

     0   :  { %7 = vsyncpa [#allocation3], 0  ;;  %s893_s0 = inlined_call_operand.hbm [shape: f32[16,128], index: 0, kind: input, shape index: {}]   ;;  %s894_s1 = inlined_call_operand.hbm [shape: f32[16,128], index: 1, kind: input, shape index: {}]   ;;  %s895_s2 = inlined_call_operand.hbm [shape: f32[16,128], index: 2, kind: output, shape index: {}]  }
   0x1   :  { %9 = vsyncpa [#allocation3 + $0x1], 0 }
   0x2   :  { %10 = vsyncpa [#allocation6], 0 }
   0x3   :  { %12 = vsyncpa [#allocation6 + $0x1], 0 }
   0x4   :  { %13 = vsyncpa [#allocation4], 0 }
   0x5   :  { %15 = vsyncpa [#allocation4 + $0x1], 0  ;;  %s700_s9 = smov 0   ;;  %s702_s10 = smov 0  }
   0x6   :  { %s704_s11 = smov 0   ;;  %s706_s12 = smov 0  }
   0x7   :  { %s708_s13 = smov 0   ;;  %s710_s14 = smov 0  }
   0x8   :  { %s712_s15 = smov 0   ;;  %s714_s16 = smov 0  }
   0x9 LB: > { %s393_s17 = sadd.s32 4294967295, %s677_s16   ;;  %s394_s18 = sadd.s32 4294967294, %s677_s16   ;;  %s677_s16 = sphi %s714_s16, %s21_s16   ;;  %s673_s15 = sphi %s712_s15, %s914_s15   ;;  %s669_s14 = sphi %s710_s14, %s913_s14   ;;  %s665_s13 = sphi %s708_s13, %s883_s13   ;;  %s661_s12 = sphi %s706_s12, %s912_s12   ;;  %s657_s11 = sphi %s704_s11, %s911_s11   ;;  %s653_s10 = sphi %s702_s10, %s910_s10   ;;  %s649_s9 = sphi %s700_s9, %s909_s9  }
   0xa   : > { %s33_s19 = sadd.s32 1, %s673_s15  ;;  %p646_p1 = scmp.ne.s32.totalorder %s665_s13, 0 }
   0xb   : > { %p35_p0 = scmp.ge.s32.totalorder %s33_s19, 2  ;;  %p54_p2 = scmp.eq.s32.totalorder %s677_s16, 0 }
   0xc   : > { %p59_p3 = scmp.ne.s32.totalorder %s665_s13, %s661_s12  ;;  %p60_p5 = scmp.eq.s32.totalorder %s393_s17, 0 }
   0xd   : > { %s916_s19 = smov (%p35_p0, %s33_s19), 0  ;;  %p746_p4 = por %p646_p1, %p54_p2 }
   0xe   : > { %p750_p6 = por %p60_p5, %p59_p3  ;;  %s101_s22 = ssub.s32 %s673_s15, %s916_s19 }
   0xf   : > { %p102_p7 = scmp.eq.s32.totalorder %s101_s22, 0  ;;  %s104_s23 = sadd.s32 1, %s657_s11 }
  0x10   : > { %s899_s21 = scalar_select %p750_p6, 1, 0 }
  0x11   : > { %s758_s24 = scalar_select %p102_p7, %s657_s11, %s104_s23  }
  0x12   : > { %p114_p8 = scmp.ne.s32.totalorder %s657_s11, %s653_s10  ;;  %p115_p9 = scmp.eq.s32.totalorder %s393_s17, 1 }
  0x13   : > { %p120_p10 = scmp.ne.s32.totalorder %s653_s10, %s649_s9  ;;  %p121_p11 = scmp.eq.s32.totalorder %s394_s18, 1 }
  0x14   : > { %p764_p12 = por %p115_p9, %p114_p8  ;;  %p431_p1 = scmp.lt.s32.totalorder %s677_s16, 2 }
  0x15   : > { %p769_p0 = por %p121_p11, %p120_p10  ;;  %s679_s27 = smov [#allocation2]  }
  0x16   : > { %s900_s25 = scalar_select %p764_p12, 1, 0 }
  0x17   : > { %s901_s26 = scalar_select %p769_p0, 1, 0 }
  0x18   : > { %s155_s28 = sshll.u32 %s679_s27, 4  ;;  %p776_p2 = pnand %p431_p1, %p746_p4  ;;  %s156_s28 = int_to_ptr.vmem [resolvable:$true] %s155_s28 }
  0x19   : > { %s516_s4 = scalar_lea.hbm %s893_s0, 256 }
  0x1a   : > { %p517_p3 = scmp.ne.s32.totalorder %s893_s0, %s516_s4  ;;  %p518_p5 = pneg %p776_p2 }
  0x1b   : > { %p523_p8 = scmp.lt.s32.totalorder %s516_s4, %s516_s4 }
  0x1c   : > { %p519_p7 = pnand %p518_p5, %p517_p3 }
  0x1e   : > { %p520_p4 = pneg %p519_p7 }
  0x20   : > { %p525_p9 = pnand %p523_p8, %p520_p4 }
  0x22   : > { %528 = shalt.err (!%p525_p9)
}
  0x23   : > { %s529_s7 = scalar_lea.vmem %s156_s28, 256  ;;  %s536_s8 = scalar_lea.vmem %s156_s28, 512 }
  0x24   : > { %p530_p10 = scmp.ne.s32.totalorder %s156_s28, %s529_s7  ;;  %p537_p13 = scmp.lt.s32.totalorder %s156_s28, %s156_s28 }
  0x25   : > { %p538_p0 = scmp.lt.s32.totalorder %s536_s8, %s529_s7 }
  0x26   : > { %p532_p11 = pnand %p530_p10, %p518_p5 }
  0x27   : > { %p539_p12 = por %p538_p0, %p537_p13 }
  0x28   : > { %p533_p1 = pneg %p532_p11 }
  0x2a   : > { %p540_p6 = pnand %p539_p12, %p533_p1 }
  0x2c   : > { %543 = shalt.err (!%p540_p6)
}
  0x2d   : > { %s680_s12 = smov 128   ;;  %s681_s17 = smov 8  }
  0x2e   : > { %423 = dma.hbm_to_vmem [thread:$0]  (!%p776_p2), %s893_s0, 256, %s156_s28, [#allocation3], %s680_s12, %s680_s12, %s681_s17  }
  0x2f   : > { %p403_p3 = scmp.ge.s32.totalorder %s677_s16, 1  ;;  %p187_p7 = scmp.lt.s32.totalorder %s677_s16, 3 }
  0x30   : > { %s682_s23 = smov [#allocation5]   ;;  %s544_s4 = scalar_lea.hbm %s894_s1, 256 }
  0x31   : > { %p801_p4 = pnand %p403_p3, %p187_p7  ;;  %s179_s27 = sshll.u32 %s682_s23, 4  ;;  %s180_s27 = int_to_ptr.vmem [resolvable:$true] %s179_s27 }
  0x32   : > { %p545_p6 = scmp.ne.s32.totalorder %s894_s1, %s544_s4  ;;  %p551_p0 = scmp.lt.s32.totalorder %s544_s4, %s544_s4 }
  0x33   : > { %s903_s22 = scalar_select %p801_p4, 1, 0 }
  0x34   : > { %p547_p12 = pnand %p545_p6, %p518_p5 }
  0x36   : > { %p548_p13 = pneg %p547_p12 }
  0x38   : > { %p553_p8 = pnand %p551_p0, %p548_p13 }
  0x3a   : > { %556 = shalt.err (!%p553_p8)
}
  0x3b   : > { %s557_s28 = scalar_lea.vmem %s180_s27, 256  ;;  %s564_s7 = scalar_lea.vmem %s180_s27, 512 }
  0x3c   : > { %p558_p9 = scmp.ne.s32.totalorder %s180_s27, %s557_s28  ;;  %p565_p1 = scmp.lt.s32.totalorder %s180_s27, %s180_s27 }
  0x3d   : > { %p566_p3 = scmp.lt.s32.totalorder %s564_s7, %s557_s28 }
  0x3e   : > { %p560_p10 = pnand %p558_p9, %p518_p5 }
  0x3f   : > { %p567_p7 = por %p566_p3, %p565_p1 }
  0x40   : > { %p561_p11 = pneg %p560_p10 }
  0x42   : > { %p568_p4 = pnand %p567_p7, %p561_p11 }
  0x44   : > { %571 = shalt.err (!%p568_p4)
}
  0x45   : > { %426 = dma.hbm_to_vmem [thread:$0]  (!%p776_p2), %s894_s1, 256, %s180_s27, [#allocation6], %s680_s12, %s680_s12, %s681_s17  }
  0x46   : > { %p904_p6 = scmp.ne.s32.totalorder %s903_s22, 0 }
  0x47   : > { %s193_s20 = sand.u32 (!%p904_p6), 1, %s665_s13   ;;  %p905_p5 = scmp.ne.s32.totalorder (!%p904_p6), %s899_s21, 0 }
  0x48   : > { %191 = sbr.rel (%p904_p6) target bundleno = 144 (0x90), region = 28  ;;  %s404_s23 = sshll.u32 (!%p904_p6), %s193_s20, 4 }
  0x49   : > { %s194_s30 = scalar_lea.sflag (!%p904_p6), [#allocation3], %s193_s20  ;;  %s197_s3 = scalar_lea.vmem (!%p904_p6), [#allocation2], %s404_s23 }
  0x4d   : > { %635 = dma.done.wait (%p905_p5), %s194_s30, 256  }
  0x4e   : > { %637 = vsyncadd (%p905_p5), %s194_s30, 4294967040  ;;  %s203_s29 = scalar_lea.sflag [#allocation6], %s193_s20  ;;  %s829_s4 = scalar_lea.vmem [#allocation5], %s404_s23 }
  0x4f   : > { %639 = dma.done.wait (%p905_p5), %s203_s29, 256  }
  0x50   : > { %641 = vsyncadd (%p905_p5), %s203_s29, 4294967040  ;;  %s229_s12 = sand.u32 1, %s653_s10   ;;  %v683_v0 = vmov 0.0   ;;  %p407_p2 = scmp.ge.s32.totalorder %s669_s14, 1 }
  0x51   : > { %s406_s17 = sshll.u32 %s229_s12, 3 }
  0x52   : > { %s838_s22 = scalar_lea.vmem [#allocation7], %s406_s17  ;;  %249 = sbr.rel (%p407_p2) target bundleno = 120 (0x78), region = 44 }
  0x53   : > { %244 = vst [vmem:[%s838_s22] sm:$0xff] %v683_v0 }
  0x57   : > { %v250_v1 = vld [vmem:[%s197_s3] sm:$0xff]  ;;  %v251_v2 = vld [vmem:[%s197_s3 + $0x8] sm:$0xff] }
  0x58   : > { %508 = vlog2.f32 %v250_v1  ;;  %v260_v3 = vsub.f32 1.0, %v250_v1  ;;  %v261_v4 = vsub.f32 1.0, %v251_v2  ;;  %v252_v16 = vld [vmem:[%s829_s4] sm:$0xff]  ;;  %v253_v18 = vld [vmem:[%s829_s4 + $0x8] sm:$0xff] }
  0x59   : > { %510 = vlog2.f32 %v251_v2 }
  0x5a   : > { %512 = vlog2.f32 %v260_v3  ;;  %v274_v25 = vld [vmem:[%s838_s22] sm:$0xff] }
  0x5b   : > { %514 = vlog2.f32 %v261_v4 }
  0x65   : > { %v509_v5 = vpop.eup %508 }
  0x66   : > { %v511_v6 = vpop.eup %510  ;;  %v255_v7 = vmul.f32 0.6931472, %v509_v5 }
  0x67   : > { %v513_v8 = vpop.eup %512  ;;  %v257_v9 = vmul.f32 0.6931472, %v511_v6 }
  0x68   : > { %v515_v10 = vpop.eup %514  ;;  %v258_v11 = vmax.f32 %v255_v7, -100.0  ;;  %v263_v12 = vmul.f32 0.6931472, %v513_v8 }
  0x69   : > { %v259_v13 = vmax.f32 %v257_v9, -100.0  ;;  %v265_v14 = vmul.f32 0.6931472, %v515_v10 }
  0x6a   : > { %v266_v15 = vmax.f32 %v263_v12, -100.0 }
  0x6b   : > { %v267_v17 = vmax.f32 %v265_v14, -100.0 }
  0x6c   : > { %v268_v19 = vsub.f32 %v258_v11, %v266_v15 }
  0x6d   : > { %v269_v20 = vsub.f32 %v259_v13, %v267_v17 }
  0x6e   : > { %v270_v21 = vmul.f32 %v268_v19, %v252_v16 }
  0x6f   : > { %v271_v22 = vmul.f32 %v269_v20, %v253_v18 }
  0x70   : > { %v272_v23 = vadd.f32 %v270_v21, %v266_v15 }
  0x71   : > { %v273_v24 = vadd.f32 %v271_v22, %v267_v17 }
  0x73   : > { %v275_v26 = vadd.f32 %v273_v24, %v272_v23 }
  0x75   : > { %v276_v27 = vadd.f32 %v275_v26, %v274_v25 }
  0x77   : > { %277 = vst [vmem:[%s838_s22] sm:$0xff] %v276_v27 }
  0x78 PF: > { %s409_s21 = sshll.u32 %s669_s14, 7  ;;  %s292_s28 = sshll.u32 %s838_s22, 4  ;;  %s293_s28 = int_to_ptr.vmem [resolvable:$true] %s292_s28 }
  0x79   : > { %s290_s6 = scalar_lea.hbm %s895_s2, %s409_s21  ;;  %s279_s7 = scalar_lea.sflag [#allocation4], %s229_s12 }
  0x7a   : > { %s572_s8 = scalar_lea.vmem %s293_s28, 128  ;;  %p906_p12 = scmp.ne.s32.totalorder %s900_s25, 0 }
  0x7b   : > { %p573_p4 = scmp.ne.s32.totalorder %s293_s28, %s572_s8  ;;  %s684_s18 = smov [#allocation7]  }
  0x7c   : > { %s576_s20 = sshll.u32 %s684_s18, 4  ;;  %s577_s20 = int_to_ptr.vmem [resolvable:$false] %s576_s20 }
  0x7d   : > { %p574_p13 = pnand %p573_p4, %p906_p12  ;;  %s578_s23 = scalar_lea.vmem %s577_s20, 256 }
  0x7e   : > { %p579_p8 = scmp.lt.s32.totalorder %s293_s28, %s577_s20  ;;  %p580_p9 = scmp.lt.s32.totalorder %s578_s23, %s572_s8 }
  0x7f   : > { %p575_p0 = pneg %p574_p13 }
  0x80   : > { %p581_p10 = por %p580_p9, %p579_p8 }
  0x82   : > { %p582_p11 = pnand %p581_p10, %p575_p0 }
  0x84   : > { %585 = shalt.err (!%p582_p11)
}
  0x85   : > { %s586_s14 = scalar_lea.hbm %s290_s6, 128  ;;  %s590_s29 = scalar_lea.hbm %s895_s2, 256 }
  0x86   : > { %p587_p1 = scmp.ne.s32.totalorder %s290_s6, %s586_s14  ;;  %p591_p6 = scmp.lt.s32.totalorder %s290_s6, %s895_s2 }
  0x87   : > { %p592_p5 = scmp.lt.s32.totalorder %s590_s29, %s586_s14 }
  0x88   : > { %p588_p3 = pnand %p587_p1, %p906_p12 }
  0x89   : > { %p593_p2 = por %p592_p5, %p591_p6 }
  0x8a   : > { %p589_p7 = pneg %p588_p3 }
  0x8c   : > { %p594_p4 = pnand %p593_p2, %p589_p7 }
  0x8e   : > { %597 = shalt.err (!%p594_p4)
}
  0x8f   : > { %418 = dma.vmem_to_hbm [thread:$0]  (%p906_p12), %s293_s28, 128, %s290_s6, %s279_s7  }
  0x90 PF: > { %s304_s17 = sand.u32 1, %s649_s9   ;;  %p907_p13 = scmp.ne.s32.totalorder %s901_s26, 0 }
  0x91   : > { %p908_p0 = scmp.ge.s32.totalorder %s677_s16, 2  ;;  %s305_s22 = scalar_lea.sflag [#allocation4], %s304_s17 }
  0x93   : > { %p428_p8 = pnand %p908_p0, %p907_p13 }
  0x95   : > { %p429_p9 = pneg %p428_p8 }
  0x97   : > { %643 = dma.done.wait (%p429_p9), %s305_s22, 128  }
  0x98   : > { %645 = vsyncadd (%p429_p9), %s305_s22, 4294967168  ;;  %s21_s16 = sadd.s32 1, %s677_s16   ;;  %s909_s9 = smov %s653_s10 }
  0x99   : > { %p18_p10 = scmp.ge.s32.totalorder %s21_s16, 4   ;;  %s910_s10 = smov %s657_s11 }
  0x9a   : > { %s911_s11 = smov %s758_s24  ;;  %s912_s12 = smov %s665_s13 }
  0x9b   : > { %s883_s13 = smov 0   ;;  %s913_s14 = smov %s673_s15 }
  0x9c   : > { %s914_s15 = smov %s916_s19  ;;  %20 = sbr.rel (!%p18_p10) target bundleno = 9 (0x9), region = 94 }
  0xa1   :  { %310 = vsyncpa [#allocation3], 1 }
  0xa2   :  { %312 = vsyncpa [#allocation3 + $0x1], 1 }
  0xa3   :  { %313 = vsyncpa [#allocation6], 1 }
  0xa4   :  { %315 = vsyncpa [#allocation6 + $0x1], 1 }
  0xa5   :  { %316 = vsyncpa [#allocation4], 1 }
  0xa6   :  { %318 = vsyncpa [#allocation4 + $0x1], 1 }

</bundles_post_ra>
